<compile_context>
chip_gen: v6e
topology: v6e:2x2x1
jax: 0.10.0
libtpu: 0.0.40
codegen_flags: <defaults>
</compile_context>

<pallas_src>
from functools import partial

import jax
import jax.numpy as jnp
from jax.experimental import pallas as pl
from jax.experimental.pallas import tpu as pltpu


def _round_up(n, m):
    return ((n + m - 1) // m) * m


def _num_tensorcores():
    """2 tiles on dual-TC v7x, 1 otherwise (v5e / v6e / unknown)."""
    try:
        kind = jax.devices()[0].device_kind.lower()
        if "7" in kind:
            return 2
    except Exception:
        pass
    return 1


def dqn_kernel(x_ref, w1_ref, b1_ref, w2_ref, b2_ref, w3_ref, b3_ref, o_ref):
    # One (TILE_B, in_dim) tile of states -> (TILE_B, out_pad) Q-values (lane-dense).
    mm_dtype = w1_ref.dtype          # bf16 on the fast path, f32 otherwise
    x = x_ref[...]

    h = jnp.dot(x.astype(mm_dtype), w1_ref[...], preferred_element_type=jnp.float32)
    h = jnp.maximum(h + b1_ref[...], 0.0)        # f32 bias + ReLU on the VPU

    h = jnp.dot(h.astype(mm_dtype), w2_ref[...], preferred_element_type=jnp.float32)
    h = jnp.maximum(h + b2_ref[...], 0.0)

    out = jnp.dot(h.astype(mm_dtype), w3_ref[...], preferred_element_type=jnp.float32)
    o_ref[...] = (out + b3_ref[...]).astype(o_ref.dtype)


def init_params(key, input_dim, output_dim, hidden=128):
    # Deterministic init ~ PyTorch's U(-1/sqrt(fan_in), 1/sqrt(fan_in)).
    ks = jax.random.split(key, 6)

    def lin(kw, kb, fan_in, fan_out):
        bound = 1.0 / jnp.sqrt(jnp.float32(fan_in))
        w = jax.random.uniform(kw, (fan_in, fan_out), jnp.float32, -bound, bound)
        b = jax.random.uniform(kb, (1, fan_out), jnp.float32, -bound, bound)
        return w, b

    w1, b1 = lin(ks[0], ks[1], input_dim, hidden)
    w2, b2 = lin(ks[2], ks[3], hidden, hidden)
    w3, b3 = lin(ks[4], ks[5], hidden, output_dim)
    return (w1, b1, w2, b2, w3, b3)


def prepare_params(params, *, use_bf16=True):
    """One-time prep (do this at init / whenever params update, NOT per forward):
       - zero-pad the output layer's columns up to a multiple of 128 (lane-dense stores)
       - optionally cast the weight matrices to bf16 (biases stay f32)."""
    w1, b1, w2, b2, w3, b3 = params
    out_dim = w3.shape[1]
    out_pad = _round_up(out_dim, 128)
    w3 = jnp.pad(w3, ((0, 0), (0, out_pad - out_dim)))
    b3 = jnp.pad(b3, ((0, 0), (0, out_pad - out_dim)))
    wdt = jnp.bfloat16 if use_bf16 else jnp.float32
    prepped = (w1.astype(wdt), b1, w2.astype(wdt), b2, w3.astype(wdt), b3)
    return prepped, out_dim


@partial(jax.jit, static_argnames=("out_dim", "num_tiles"))
def dqn_forward(x, prepped_params, out_dim, num_tiles=1):
    """Fused DQN forward. x: (B, input_dim) f32 -> (B, out_dim) f32."""
    w1, b1, w2, b2, w3, b3 = prepped_params
    B, in_dim = x.shape
    hidden = w1.shape[1]
    out_pad = w3.shape[1]

    # One batch tile per TensorCore; tile is a multiple of 8 (sublane).
    tile_b = _round_up(max(8, pl.cdiv(B, num_tiles)), 8)
    b_pad = tile_b * num_tiles
    if b_pad != B:
        x = jnp.pad(x, ((0, b_pad - B), (0, 0)))

    flops = 2 * b_pad * (in_dim * hidden + hidden * hidden + hidden * out_pad)
    bytes_accessed = (
        b_pad * in_dim * x.dtype.itemsize
        + sum(int(a.size) * a.dtype.itemsize for a in (w1, b1, w2, b2, w3, b3))
        + b_pad * out_pad * 4
    )

    def batch_spec(shape):      # tiled over the batch grid axis
        return pl.BlockSpec(shape, lambda i: (i, 0))

    def resident_spec(shape):   # same block every grid step -> stays VMEM-resident
        return pl.BlockSpec(shape, lambda i: (0, 0))

    out = pl.pallas_call(
        dqn_kernel,
        out_shape=jax.ShapeDtypeStruct((b_pad, out_pad), jnp.float32),
        grid=(num_tiles,),
        in_specs=[
            batch_spec((tile_b, in_dim)),
            resident_spec((in_dim, hidden)), resident_spec((1, hidden)),
            resident_spec((hidden, hidden)), resident_spec((1, hidden)),
            resident_spec((hidden, out_pad)), resident_spec((1, out_pad)),
        ],
        out_specs=batch_spec((tile_b, out_pad)),
        compiler_params=pltpu.CompilerParams(
            dimension_semantics=("parallel",),   # shard batch tiles across v7x's 2 TCs
        ),
        cost_estimate=pl.CostEstimate(
            flops=flops, transcendentals=0, bytes_accessed=bytes_accessed),
    )(x, w1, b1, w2, b2, w3, b3)
    return out[:B, :out_dim]


def reference_forward(x, prepped_params, out_dim):
    # Pure-JAX reference mirroring the kernel's operand dtypes exactly.
    w1, b1, w2, b2, w3, b3 = prepped_params
    mm = w1.dtype
    h = jnp.dot(x.astype(mm), w1, preferred_element_type=jnp.float32) + b1
    h = jnp.maximum(h, 0.0)
    h = jnp.dot(h.astype(mm), w2, preferred_element_type=jnp.float32) + b2
    h = jnp.maximum(h, 0.0)
    out = jnp.dot(h.astype(mm), w3, preferred_element_type=jnp.float32) + b3
    return out[:, :out_dim]


if __name__ == "__main__":
    key = jax.random.PRNGKey(0)
    k_x, k_p = jax.random.split(key)

    # DQN-like shapes: 4-d state, 2 actions, hidden=128 (fixed by the module).
    input_dim, output_dim, hidden = 4, 2, 128
    B = 64
    x = jax.random.normal(k_x, (B, input_dim), jnp.float32)
    params = init_params(k_p, input_dim, output_dim, hidden)

    num_tiles = _num_tensorcores()   # 1 on v5e/v6e, 2 on v7x

    # Exact-semantics f32 path (matches the PyTorch f32 module).
    p_f32, out_dim = prepare_params(params, use_bf16=False)
    out_f32 = jax.block_until_ready(dqn_forward(x, p_f32, out_dim, num_tiles=num_tiles))
    ref_f32 = reference_forward(x, p_f32, out_dim)
    assert out_f32.shape == (B, output_dim)
    assert jnp.allclose(out_f32, ref_f32, atol=1e-4, rtol=1e-4)

    # bf16 fast path (weights pre-cast once; f32 accumulation / bias / ReLU).
    p_bf16, _ = prepare_params(params, use_bf16=True)
    out_bf16 = jax.block_until_ready(dqn_forward(x, p_bf16, out_dim, num_tiles=num_tiles))
    assert jnp.allclose(out_bf16, reference_forward(x, p_bf16, out_dim),
                        atol=1e-3, rtol=1e-3)
    assert jnp.allclose(out_bf16, ref_f32, atol=5e-2, rtol=5e-2)

    # Non-multiple-of-tile batch exercises the padding path.
    out_small = jax.block_until_ready(dqn_forward(x[:37], p_f32, out_dim, num_tiles=num_tiles))
    assert out_small.shape == (37, output_dim)
    assert jnp.allclose(out_small, ref_f32[:37], atol=1e-4, rtol=1e-4)

    print("KERNEL_OK")
</pallas_src>

<mosaic_0001>
module attributes {stable_mosaic.version = 11 : i64} {
  func.func @dqn_kernel(%arg0: i32, %arg1: memref<64x4xf32, #tpu.memory_space<vmem>>, %arg2: memref<4x128xf32, #tpu.memory_space<vmem>>, %arg3: memref<1x128xf32, #tpu.memory_space<vmem>>, %arg4: memref<128x128xf32, #tpu.memory_space<vmem>>, %arg5: memref<1x128xf32, #tpu.memory_space<vmem>>, %arg6: memref<128x128xf32, #tpu.memory_space<vmem>>, %arg7: memref<1x128xf32, #tpu.memory_space<vmem>>, %arg8: memref<64x128xf32, #tpu.memory_space<vmem>>) attributes {dimension_semantics = [#tpu.dimension_semantics<parallel>], iteration_bounds = array<i64: 1>, scalar_prefetch = 0 : i64, scratch_operands = 0 : i64, tpu.core_type = #tpu.core_type<tc>, window_params = [{transform_indices = @transform_0, window_bounds = array<i64: 64, 4>}, {pipeline_mode = #tpu.pipeline_mode<synchronous>, transform_indices = @transform_1, window_bounds = array<i64: 4, 128>}, {pipeline_mode = #tpu.pipeline_mode<synchronous>, transform_indices = @transform_2, window_bounds = array<i64: 1, 128>}, {pipeline_mode = #tpu.pipeline_mode<synchronous>, transform_indices = @transform_3, window_bounds = array<i64: 128, 128>}, {pipeline_mode = #tpu.pipeline_mode<synchronous>, transform_indices = @transform_4, window_bounds = array<i64: 1, 128>}, {pipeline_mode = #tpu.pipeline_mode<synchronous>, transform_indices = @transform_5, window_bounds = array<i64: 128, 128>}, {pipeline_mode = #tpu.pipeline_mode<synchronous>, transform_indices = @transform_6, window_bounds = array<i64: 1, 128>}, {transform_indices = @transform_7, window_bounds = array<i64: 64, 128>}]} {
    %c0 = arith.constant 0 : index
    %c0_0 = arith.constant 0 : index
    %0 = vector.load %arg1[%c0, %c0_0] : memref<64x4xf32, #tpu.memory_space<vmem>>, vector<64x4xf32>
    %c0_1 = arith.constant 0 : index
    %c0_2 = arith.constant 0 : index
    %1 = vector.load %arg2[%c0_1, %c0_2] : memref<4x128xf32, #tpu.memory_space<vmem>>, vector<4x128xf32>
    %cst = arith.constant dense<0.000000e+00> : vector<64x128xf32>
    %2 = tpu.matmul %0, %1, %cst {dimension_numbers = #tpu.dot_dimension_numbers<[1], [0], [0], [1], [0, 0, 1, 1], [], []>} : vector<64x4xf32>, vector<4x128xf32>, vector<64x128xf32> -> vector<64x128xf32>
    %c0_3 = arith.constant 0 : index
    %c0_4 = arith.constant 0 : index
    %3 = vector.load %arg3[%c0_3, %c0_4] : memref<1x128xf32, #tpu.memory_space<vmem>>, vector<1x128xf32>
    %4 = vector.broadcast %3 : vector<1x128xf32> to vector<64x128xf32>
    %5 = arith.addf %2, %4 : vector<64x128xf32>
    %cst_5 = arith.constant 0.000000e+00 : f32
    %6 = vector.broadcast %cst_5 : f32 to vector<64x128xf32>
    %7 = arith.maximumf %5, %6 : vector<64x128xf32>
    %c0_6 = arith.constant 0 : index
    %c0_7 = arith.constant 0 : index
    %8 = vector.load %arg4[%c0_6, %c0_7] : memref<128x128xf32, #tpu.memory_space<vmem>>, vector<128x128xf32>
    %cst_8 = arith.constant dense<0.000000e+00> : vector<64x128xf32>
    %9 = tpu.matmul %7, %8, %cst_8 {dimension_numbers = #tpu.dot_dimension_numbers<[1], [0], [0], [1], [0, 0, 1, 1], [], []>} : vector<64x128xf32>, vector<128x128xf32>, vector<64x128xf32> -> vector<64x128xf32>
    %c0_9 = arith.constant 0 : index
    %c0_10 = arith.constant 0 : index
    %10 = vector.load %arg5[%c0_9, %c0_10] : memref<1x128xf32, #tpu.memory_space<vmem>>, vector<1x128xf32>
    %11 = vector.broadcast %10 : vector<1x128xf32> to vector<64x128xf32>
    %12 = arith.addf %9, %11 : vector<64x128xf32>
    %cst_11 = arith.constant 0.000000e+00 : f32
    %13 = vector.broadcast %cst_11 : f32 to vector<64x128xf32>
    %14 = arith.maximumf %12, %13 : vector<64x128xf32>
    %c0_12 = arith.constant 0 : index
    %c0_13 = arith.constant 0 : index
    %15 = vector.load %arg6[%c0_12, %c0_13] : memref<128x128xf32, #tpu.memory_space<vmem>>, vector<128x128xf32>
    %cst_14 = arith.constant dense<0.000000e+00> : vector<64x128xf32>
    %16 = tpu.matmul %14, %15, %cst_14 {dimension_numbers = #tpu.dot_dimension_numbers<[1], [0], [0], [1], [0, 0, 1, 1], [], []>} : vector<64x128xf32>, vector<128x128xf32>, vector<64x128xf32> -> vector<64x128xf32>
    %c0_15 = arith.constant 0 : index
    %c0_16 = arith.constant 0 : index
    %17 = vector.load %arg7[%c0_15, %c0_16] : memref<1x128xf32, #tpu.memory_space<vmem>>, vector<1x128xf32>
    %18 = vector.broadcast %17 : vector<1x128xf32> to vector<64x128xf32>
    %19 = arith.addf %16, %18 : vector<64x128xf32>
    %c0_17 = arith.constant 0 : index
    %c0_18 = arith.constant 0 : index
    %20 = vector.load %arg8[%c0_17, %c0_18] : memref<64x128xf32, #tpu.memory_space<vmem>>, vector<64x128xf32>
    tpu.vector_store %arg8[%c0_17, %c0_18], %19 {strides = array<i32>} : memref<64x128xf32, #tpu.memory_space<vmem>>, vector<64x128xf32>,
    return
  }
  func.func @transform_0(%arg0: i32) -> (i32, i32) {
    %c0_i32 = arith.constant 0 : i32
    %c0_i32_0 = arith.constant 0 : i32
    return %arg0, %c0_i32 : i32, i32
  }
  func.func @transform_1(%arg0: i32) -> (i32, i32) {
    %c0_i32 = arith.constant 0 : i32
    %c0_i32_0 = arith.constant 0 : i32
    %c0_i32_1 = arith.constant 0 : i32
    return %c0_i32, %c0_i32_0 : i32, i32
  }
  func.func @transform_2(%arg0: i32) -> (i32, i32) {
    %c0_i32 = arith.constant 0 : i32
    %c0_i32_0 = arith.constant 0 : i32
    %c0_i32_1 = arith.constant 0 : i32
    return %c0_i32, %c0_i32_0 : i32, i32
  }
  func.func @transform_3(%arg0: i32) -> (i32, i32) {
    %c0_i32 = arith.constant 0 : i32
    %c0_i32_0 = arith.constant 0 : i32
    %c0_i32_1 = arith.constant 0 : i32
    return %c0_i32, %c0_i32_0 : i32, i32
  }
  func.func @transform_4(%arg0: i32) -> (i32, i32) {
    %c0_i32 = arith.constant 0 : i32
    %c0_i32_0 = arith.constant 0 : i32
    %c0_i32_1 = arith.constant 0 : i32
    return %c0_i32, %c0_i32_0 : i32, i32
  }
  func.func @transform_5(%arg0: i32) -> (i32, i32) {
    %c0_i32 = arith.constant 0 : i32
    %c0_i32_0 = arith.constant 0 : i32
    %c0_i32_1 = arith.constant 0 : i32
    return %c0_i32, %c0_i32_0 : i32, i32
  }
  func.func @transform_6(%arg0: i32) -> (i32, i32) {
    %c0_i32 = arith.constant 0 : i32
    %c0_i32_0 = arith.constant 0 : i32
    %c0_i32_1 = arith.constant 0 : i32
    return %c0_i32, %c0_i32_0 : i32, i32
  }
  func.func @transform_7(%arg0: i32) -> (i32, i32) {
    %c0_i32 = arith.constant 0 : i32
    %c0_i32_0 = arith.constant 0 : i32
    return %arg0, %c0_i32 : i32, i32
  }
}

</mosaic_0001>

<bundles_post_ra>
// kernel: dqn_forward.1
= control target key start
LH: loop header
LB: loop body
LE: loop exit
PB: predicated region body
PF: predicated region fallthrough
CT: control target
= control target key end

     0   :  { %12 = vsyncpa [#allocation3], 0  ;;  %s827_s0 = inlined_call_operand.vmem [shape: f32[64,4], index: 0, kind: input, shape index: {}]   ;;  %s828_s1 = inlined_call_operand.vmem [shape: f32[4,128], index: 1, kind: input, shape index: {}]   ;;  %s829_s2 = inlined_call_operand.vmem [shape: f32[1,128], index: 2, kind: input, shape index: {}]   ;;  %s830_s3 = inlined_call_operand.hbm [shape: f32[128,128], index: 3, kind: input, shape index: {}]   ;;  %s831_s4 = inlined_call_operand.vmem [shape: f32[1,128], index: 4, kind: input, shape index: {}]   ;;  %s832_s5 = inlined_call_operand.hbm [shape: f32[128,128], index: 5, kind: input, shape index: {}]   ;;  %s833_s6 = inlined_call_operand.vmem [shape: f32[1,128], index: 6, kind: input, shape index: {}]   ;;  %s834_s7 = inlined_call_operand.vmem [shape: f32[64,128], index: 7, kind: output, shape index: {}]  }
   0x1   :  { %13 = vsyncpa [#allocation5], 0  ;;  %s709_s24 = smov [#allocation2]  }
   0x2   :  { %s25_s25 = sshll.u32 %s709_s24, 4  ;;  %s26_s25 = int_to_ptr.vmem [resolvable:$true] %s25_s25 }
   0x3   :  { %s673_s26 = scalar_lea.vmem %s26_s25, 2048  ;;  %p678_p1 = scmp.lt.s32.totalorder %s26_s25, %s26_s25 }
   0x4   :  { %p674_p0 = scmp.ne.s32.totalorder %s26_s25, %s673_s26  ;;  %p679_p2 = scmp.lt.s32.totalorder %s673_s26, %s673_s26 }
   0x6   :  { %p680_p3 = por %p679_p2, %p678_p1 }
   0x8   :  { %p681_p4 = pnand %p680_p3, %p674_p0 }
   0xa   :  { %684 = shalt.err (!%p681_p4)
}
   0xb   :  { %s710_s27 = smov 128   ;;  %s711_s28 = smov 8  }
   0xc   :  { %31 = dma.hbm_to_vmem [thread:$0]  %s830_s3, 2048, %s26_s25, [#allocation3], %s710_s27, %s710_s27, %s711_s28  }
   0xd   :  { %s712_s8 = smov [#allocation4]  }
   0xe   :  { %s39_s9 = sshll.u32 %s712_s8, 4  ;;  %s40_s9 = int_to_ptr.vmem [resolvable:$true] %s39_s9 }
   0xf   :  { %s693_s10 = scalar_lea.vmem %s40_s9, 2048  ;;  %p698_p6 = scmp.lt.s32.totalorder %s40_s9, %s40_s9 }
  0x10   :  { %p694_p5 = scmp.ne.s32.totalorder %s40_s9, %s693_s10  ;;  %p699_p7 = scmp.lt.s32.totalorder %s693_s10, %s693_s10 }
  0x12   :  { %p700_p8 = por %p699_p7, %p698_p6 }
  0x14   :  { %p701_p9 = pnand %p700_p8, %p694_p5 }
  0x16   :  { %704 = shalt.err (!%p701_p9)
}
  0x17   :  { %45 = dma.hbm_to_vmem [thread:$0]  %s832_s5, 2048, %s40_s9, [#allocation5], %s710_s27, %s710_s27, %s711_s28  }
  0x18   :  { %705 = dma.done.wait [#allocation3], 2048  }
  0x19   :  { %706 = vsyncadd [#allocation3], 4294965248 }
  0x1a   :  { %707 = dma.done.wait [#allocation5], 2048  }
  0x1b   :  { %708 = vsyncadd [#allocation5], 4294965248  ;;  %vm95_vm0 = vcmask 1043456   ;;  %vm70_vm1 = vcmask 31744   ;;  %v62_v0 = vld [vmem:[%s828_s1] sm:$0xf] }
  0x1c   :  { %v54_v1 = vld [vmem:[%s827_s0] sm:$0xff]  ;;  %v55_v2 = vld [vmem:[%s827_s0 + $0x8] sm:$0xff]  ;;  %559 = vmatprep.subr.msk.mxu0 %vm95_vm0, %v62_v0  ;;  %v56_v3 = vld [vmem:[%s827_s0 + $0x10] sm:$0xff] }
  0x1d   :  { %561 = vmatprep.mubr.msk.f32.mxu0 %vm70_vm1, %v54_v1  ;;  %560 = vmatpush3.msk.msra.mxu0 %vm95_vm0, %v62_v0  ;;  %v227_v4 = vld [vmem:[#allocation2 + $0x78] sm:$0xff]  ;;  %v226_v5 = vld [vmem:[#allocation2 + $0x70] sm:$0xff]  ;;  %v58_v7 = vld [vmem:[%s827_s0 + $0x20] sm:$0xff] }
  0x1e   :  { %562 = vmatmul.mubr.msk.f32.vlgmr.msra.gmra.mxu0 %vm70_vm1, %v55_v2  ;;  %v57_v6 = vld [vmem:[%s827_s0 + $0x18] sm:$0xff]  ;;  %573 = vmatprep.subr.mxu1 %v227_v4  ;;  %v225_v8 = vld [vmem:[#allocation2 + $0x68] sm:$0xff]  ;;  %v224_v9 = vld [vmem:[#allocation2 + $0x60] sm:$0xff] }
  0x1f   :  { %564 = vmatprep.mubr.msk.f32.mxu0 %vm70_vm1, %v56_v3  ;;  %574 = vmatpush3.msra.mxu1 %v227_v4  ;;  %v59_v10 = vld [vmem:[%s827_s0 + $0x28] sm:$0xff]  ;;  %v60_v11 = vld [vmem:[%s827_s0 + $0x30] sm:$0xff]  ;;  %v223_v12 = vld [vmem:[#allocation2 + $0x58] sm:$0xff] }
  0x20   :  { %575 = vmatprep.subr.mxu1 %v226_v5  ;;  %v222_v13 = vld [vmem:[#allocation2 + $0x50] sm:$0xff]  ;;  %v61_v14 = vld [vmem:[%s827_s0 + $0x38] sm:$0xff]  ;;  %v221_v15 = vld [vmem:[#allocation2 + $0x48] sm:$0xff] }
  0x21   :  { %576 = vmatpush3.msra.mxu1 %v226_v5  ;;  %v220_v16 = vld [vmem:[#allocation2 + $0x40] sm:$0xff]  ;;  %v219_v17 = vld [vmem:[#allocation2 + $0x38] sm:$0xff]  ;;  %v218_v18 = vld [vmem:[#allocation2 + $0x30] sm:$0xff] }
  0x22   :  { %565 = vmatmul.mubr.msk.f32.gmra.mxu0 %vm70_vm1, %v57_v6  ;;  %577 = vmatprep.subr.mxu1 %v225_v8  ;;  %v217_v19 = vld [vmem:[#allocation2 + $0x28] sm:$0xff]  ;;  %v216_v20 = vld [vmem:[#allocation2 + $0x20] sm:$0xff]  ;;  %v215_v21 = vld [vmem:[#allocation2 + $0x18] sm:$0xff] }
  0x23   :  { %567 = vmatprep.mubr.msk.f32.mxu0 %vm70_vm1, %v58_v7  ;;  %578 = vmatpush3.msra.mxu1 %v225_v8  ;;  %v214_v22 = vld [vmem:[#allocation2 + $0x10] sm:$0xff]  ;;  %v213_v23 = vld [vmem:[#allocation2 + $0x8] sm:$0xff]  ;;  %v212_v24 = vld [vmem:[#allocation2] sm:$0xff] }
  0x24   :  { %579 = vmatprep.subr.mxu1 %v224_v9  ;;  %v363_v25 = vld [vmem:[#allocation4 + $0x78] sm:$0xff]  ;;  %v362_v26 = vld [vmem:[#allocation4 + $0x70] sm:$0xff]  ;;  %v361_v27 = vld [vmem:[#allocation4 + $0x68] sm:$0xff] }
  0x25   :  { %580 = vmatpush3.msra.mxu1 %v224_v9  ;;  %617 = vmatprep.subr.mxu0 %v363_v25  ;;  %v360_v28 = vld [vmem:[#allocation4 + $0x60] sm:$0xff]  ;;  %v359_v29 = vld [vmem:[#allocation4 + $0x58] sm:$0xff]  ;;  %v358_v30 = vld [vmem:[#allocation4 + $0x50] sm:$0xff] }
  0x26   :  { %568 = vmatmul.mubr.msk.f32.gmra.mxu0 %vm70_vm1, %v59_v10  ;;  %581 = vmatprep.subr.mxu1 %v223_v12  ;;  %v357_v31 = vld [vmem:[#allocation4 + $0x48] sm:$0xff]  ;;  %v356_v32 = vld [vmem:[#allocation4 + $0x40] sm:$0xff]  ;;  %v355_v33 = vld [vmem:[#allocation4 + $0x38] sm:$0xff] }
  0x27   :  { %570 = vmatprep.mubr.msk.f32.mxu0 %vm70_vm1, %v60_v11  ;;  %582 = vmatpush3.msra.mxu1 %v223_v12  ;;  %v354_v34 = vld [vmem:[#allocation4 + $0x30] sm:$0xff]  ;;  %v353_v35 = vld [vmem:[#allocation4 + $0x28] sm:$0xff]  ;;  %v352_v36 = vld [vmem:[#allocation4 + $0x20] sm:$0xff] }
  0x28   :  { %583 = vmatprep.subr.mxu1 %v222_v13  ;;  %618 = vmatpush3.msra.mxu0 %v363_v25  ;;  %v490_v37 = vld [vmem:[%s829_s2] ss:$0 sm:$0xff]  ;;  %v351_v62 = vld [vmem:[#allocation4 + $0x18] sm:$0xff]  ;;  %v350_v63 = vld [vmem:[#allocation4 + $0x10] sm:$0xff] }
  0x29   :  { %584 = vmatpush3.msra.mxu1 %v222_v13  ;;  %619 = vmatprep.subr.mxu0 %v362_v26  ;;  %v349_v0 = vld [vmem:[#allocation4 + $0x8] sm:$0xff]  ;;  %v348_v1 = vld [vmem:[#allocation4] sm:$0xff] }
  0x2a   :  { %571 = vmatmul.mubr.msk.f32.gmra.mxu0 %vm70_vm1, %v61_v14  ;;  %585 = vmatprep.subr.mxu1 %v221_v15  ;;  %v500_v2 = vld [vmem:[%s831_s4] ss:$0 sm:$0xff] }
  0x2b   :  { %586 = vmatpush3.msra.mxu1 %v221_v15  ;;  %620 = vmatpush3.msra.mxu0 %v362_v26 }
  0x2c   :  { %587 = vmatprep.subr.mxu1 %v220_v16  ;;  %621 = vmatprep.subr.mxu0 %v361_v27 }
  0x2d   :  { %588 = vmatpush3.msra.mxu1 %v220_v16  ;;  %622 = vmatpush3.msra.mxu0 %v361_v27  ;;  %v501_v27 = vld [vmem:[%s833_s6] ss:$0 sm:$0xff] }
  0x2e   :  { %589 = vmatprep.subr.mxu1 %v219_v17  ;;  %623 = vmatprep.subr.mxu0 %v360_v28 }
  0x2f   :  { %590 = vmatpush3.msra.mxu1 %v219_v17  ;;  %624 = vmatpush3.msra.mxu0 %v360_v28 }
  0x30   :  { %591 = vmatprep.subr.mxu1 %v218_v18  ;;  %625 = vmatprep.subr.mxu0 %v359_v29 }
  0x31   :  { %592 = vmatpush3.msra.mxu1 %v218_v18  ;;  %626 = vmatpush3.msra.mxu0 %v359_v29 }
  0x32   :  { %593 = vmatprep.subr.mxu1 %v217_v19  ;;  %627 = vmatprep.subr.mxu0 %v358_v30 }
  0x33   :  { %594 = vmatpush3.msra.mxu1 %v217_v19  ;;  %628 = vmatpush3.msra.mxu0 %v358_v30 }
  0x34   :  { %595 = vmatprep.subr.mxu1 %v216_v20  ;;  %629 = vmatprep.subr.mxu0 %v357_v31 }
  0x35   :  { %596 = vmatpush3.msra.mxu1 %v216_v20  ;;  %630 = vmatpush3.msra.mxu0 %v357_v31 }
  0x36   :  { %597 = vmatprep.subr.mxu1 %v215_v21  ;;  %631 = vmatprep.subr.mxu0 %v356_v32 }
  0x37   :  { %598 = vmatpush3.msra.mxu1 %v215_v21  ;;  %632 = vmatpush3.msra.mxu0 %v356_v32 }
  0x38   :  { %599 = vmatprep.subr.mxu1 %v214_v22  ;;  %633 = vmatprep.subr.mxu0 %v355_v33 }
  0x39   :  { %600 = vmatpush3.msra.mxu1 %v214_v22  ;;  %634 = vmatpush3.msra.mxu0 %v355_v33 }
  0x3a   :  { %601 = vmatprep.subr.mxu1 %v213_v23  ;;  %635 = vmatprep.subr.mxu0 %v354_v34 }
  0x3b   :  { %602 = vmatpush3.msra.mxu1 %v213_v23  ;;  %636 = vmatpush3.msra.mxu0 %v354_v34 }
  0x3c   :  { %603 = vmatprep.subr.mxu1 %v212_v24  ;;  %637 = vmatprep.subr.mxu0 %v353_v35 }
  0x3d   :  { %604 = vmatpush3.msra.mxu1 %v212_v24  ;;  %638 = vmatpush3.msra.mxu0 %v353_v35 }
  0x3e   :  { %639 = vmatprep.subr.mxu0 %v352_v36 }
  0x3f   :  { %640 = vmatpush3.msra.mxu0 %v352_v36 }
  0x40   :  { %641 = vmatprep.subr.mxu0 %v351_v62 }
  0x41   :  { %642 = vmatpush3.msra.mxu0 %v351_v62 }
  0x42   :  { %643 = vmatprep.subr.mxu0 %v350_v63 }
  0x43   :  { %644 = vmatpush3.msra.mxu0 %v350_v63 }
  0x44   :  { %645 = vmatprep.subr.mxu0 %v349_v0 }
  0x45   :  { %646 = vmatpush3.msra.mxu0 %v349_v0 }
  0x46   :  { %647 = vmatprep.subr.mxu0 %v348_v1 }
  0x47   :  { %648 = vmatpush3.msra.mxu0 %v348_v1 }
  0xde   :  { %v563_v38 = vpop.f32.mrf.mxu0 }
  0xdf   :  { %v171_v39 = vadd.f32 %v563_v38, %v490_v37 }
  0xe0   :  { %v165_v40 = vpop.f32.mrf.mxu0 }
  0xe1   :  { %v166_v41 = vadd.f32 %v490_v37, %v165_v40  ;;  %v205_v44 = vmax.f32 %v171_v39, 0.0 }
  0xe2   :  { %v566_v42 = vpop.f32.mrf.mxu0 }
  0xe3   :  { %v204_v43 = vmax.f32 %v166_v41, 0.0  ;;  %v181_v45 = vadd.f32 %v566_v42, %v490_v37 }
  0xe4   :  { %v175_v46 = vpop.f32.mrf.mxu0 }
  0xe5   :  { %v176_v47 = vadd.f32 %v490_v37, %v175_v46  ;;  %605 = vmatprep.mubr.f32.mxu1 %v204_v43  ;;  %v207_v50 = vmax.f32 %v181_v45, 0.0 }
  0xe6   :  { %v569_v48 = vpop.f32.mrf.mxu0  ;;  %606 = vmatmul.mubr.f32.vlgmr.msra.gmra.mxu1 %v205_v44 }
  0xe7   :  { %v206_v49 = vmax.f32 %v176_v47, 0.0  ;;  %v191_v51 = vadd.f32 %v569_v48, %v490_v37 }
  0xe8   :  { %v185_v52 = vpop.f32.mrf.mxu0 }
  0xe9   :  { %v186_v53 = vadd.f32 %v490_v37, %v185_v52  ;;  %608 = vmatprep.mubr.f32.mxu1 %v206_v49  ;;  %v209_v56 = vmax.f32 %v191_v51, 0.0 }
  0xea   :  { %v572_v54 = vpop.f32.mrf.mxu0  ;;  %609 = vmatmul.mubr.f32.gmra.mxu1 %v207_v50 }
  0xeb   :  { %v208_v55 = vmax.f32 %v186_v53, 0.0  ;;  %v201_v57 = vadd.f32 %v572_v54, %v490_v37 }
  0xec   :  { %v195_v58 = vpop.f32.mrf.mxu0 }
  0xed   :  { %v196_v59 = vadd.f32 %v490_v37, %v195_v58  ;;  %611 = vmatprep.mubr.f32.mxu1 %v208_v55  ;;  %v211_v61 = vmax.f32 %v201_v57, 0.0 }
  0xee   :  { %612 = vmatmul.mubr.f32.gmra.mxu1 %v209_v56 }
  0xef   :  { %v210_v60 = vmax.f32 %v196_v59, 0.0 }
  0xf1   :  { %614 = vmatprep.mubr.f32.mxu1 %v210_v60 }
  0xf2   :  { %615 = vmatmul.mubr.f32.gmra.mxu1 %v211_v61 }
 0x1a6   :  { %v607_v3 = vpop.f32.mrf.mxu1 }
 0x1a7   :  { %v307_v4 = vadd.f32 %v607_v3, %v500_v2 }
 0x1a8   :  { %v301_v5 = vpop.f32.mrf.mxu1 }
 0x1a9   :  { %v302_v6 = vadd.f32 %v500_v2, %v301_v5  ;;  %v341_v9 = vmax.f32 %v307_v4, 0.0 }
 0x1aa   :  { %v610_v7 = vpop.f32.mrf.mxu1 }
 0x1ab   :  { %v340_v8 = vmax.f32 %v302_v6, 0.0  ;;  %v317_v10 = vadd.f32 %v610_v7, %v500_v2 }
 0x1ac   :  { %v311_v11 = vpop.f32.mrf.mxu1 }
 0x1ad   :  { %v312_v12 = vadd.f32 %v500_v2, %v311_v11  ;;  %649 = vmatprep.mubr.f32.mxu0 %v340_v8  ;;  %v343_v15 = vmax.f32 %v317_v10, 0.0 }
 0x1ae   :  { %v613_v13 = vpop.f32.mrf.mxu1  ;;  %650 = vmatmul.mubr.f32.vlgmr.msra.gmra.mxu0 %v341_v9 }
 0x1af   :  { %v342_v14 = vmax.f32 %v312_v12, 0.0  ;;  %v327_v16 = vadd.f32 %v613_v13, %v500_v2 }
 0x1b0   :  { %v321_v17 = vpop.f32.mrf.mxu1 }
 0x1b1   :  { %v322_v18 = vadd.f32 %v500_v2, %v321_v17  ;;  %652 = vmatprep.mubr.f32.mxu0 %v342_v14  ;;  %v345_v21 = vmax.f32 %v327_v16, 0.0 }
 0x1b2   :  { %v616_v19 = vpop.f32.mrf.mxu1  ;;  %653 = vmatmul.mubr.f32.gmra.mxu0 %v343_v15 }
 0x1b3   :  { %v344_v20 = vmax.f32 %v322_v18, 0.0  ;;  %v337_v22 = vadd.f32 %v616_v19, %v500_v2 }
 0x1b4   :  { %v331_v23 = vpop.f32.mrf.mxu1 }
 0x1b5   :  { %v332_v24 = vadd.f32 %v500_v2, %v331_v23  ;;  %655 = vmatprep.mubr.f32.mxu0 %v344_v20  ;;  %v347_v26 = vmax.f32 %v337_v22, 0.0 }
 0x1b6   :  { %656 = vmatmul.mubr.f32.gmra.mxu0 %v345_v21 }
 0x1b7   :  { %v346_v25 = vmax.f32 %v332_v24, 0.0 }
 0x1b9   :  { %658 = vmatprep.mubr.f32.mxu0 %v346_v25 }
 0x1ba   :  { %659 = vmatmul.mubr.f32.gmra.mxu0 %v347_v26 }
 0x26e   :  { %v651_v28 = vpop.f32.mrf.mxu0 }
 0x26f   :  { %v443_v29 = vadd.f32 %v651_v28, %v501_v27 }
 0x270   :  { %v437_v30 = vpop.f32.mrf.mxu0 }
 0x271   :  { %477 = vst [vmem:[%s834_s7 + $0x8] sm:$0xff] %v443_v29  ;;  %v438_v31 = vadd.f32 %v501_v27, %v437_v30 }
 0x272   :  { %v654_v32 = vpop.f32.mrf.mxu0 }
 0x273   :  { %476 = vst [vmem:[%s834_s7] sm:$0xff] %v438_v31  ;;  %v453_v33 = vadd.f32 %v654_v32, %v501_v27 }
 0x274   :  { %v447_v34 = vpop.f32.mrf.mxu0 }
 0x275   :  { %479 = vst [vmem:[%s834_s7 + $0x18] sm:$0xff] %v453_v33  ;;  %v448_v35 = vadd.f32 %v501_v27, %v447_v34 }
 0x276   :  { %v657_v36 = vpop.f32.mrf.mxu0 }
 0x277   :  { %478 = vst [vmem:[%s834_s7 + $0x10] sm:$0xff] %v448_v35  ;;  %v463_v37 = vadd.f32 %v657_v36, %v501_v27 }
 0x278   :  { %v457_v38 = vpop.f32.mrf.mxu0 }
 0x279   :  { %481 = vst [vmem:[%s834_s7 + $0x28] sm:$0xff] %v463_v37  ;;  %v458_v39 = vadd.f32 %v501_v27, %v457_v38 }
 0x27a   :  { %v660_v40 = vpop.f32.mrf.mxu0 }
 0x27b   :  { %480 = vst [vmem:[%s834_s7 + $0x20] sm:$0xff] %v458_v39  ;;  %v473_v41 = vadd.f32 %v660_v40, %v501_v27 }
 0x27c   :  { %v467_v42 = vpop.f32.mrf.mxu0 }
 0x27d   :  { %483 = vst [vmem:[%s834_s7 + $0x38] sm:$0xff] %v473_v41  ;;  %v468_v43 = vadd.f32 %v501_v27, %v467_v42 }
 0x27f   :  { %482 = vst [vmem:[%s834_s7 + $0x30] sm:$0xff] %v468_v43 }
 0x280   :  { %488 = vsyncpa [#allocation3], 1 }
 0x281   :  { %489 = vsyncpa [#allocation5], 1 }

</bundles_post_ra>
